<compile_context>
chip_gen: v6e
topology: v6e:2x2x1
jax: 0.10.0
libtpu: 0.0.40
codegen_flags: <defaults>
</compile_context>

<pallas_src>
import functools
import math

import jax
import jax.numpy as jnp
from jax.experimental import pallas as pl
from jax.experimental.pallas import tpu as pltpu

_LANES = 128
_SUBLANES = 8
_MAX_TILE_ROWS = 2048            # (2048,128) f32 block = 1 MiB per stream per buffer
_VMEM_LIMIT_BYTES = 40 * 1024 * 1024
_SMALL_N_FAST_PATH = 1 << 16     # below this, a fused jnp expression wins


def _l1_sum_kernel(y_ref, p_ref, r_ref, ry_ref, rp_ref, rr_ref, o_ref,
                   *, total_rows, need_mask):
    """Accumulate sum(|y-ry| + |p-rp| + |r-rr|) into a single (8,128) tile."""
    step = pl.program_id(0)

    @pl.when(step == 0)
    def _():
        o_ref[...] = jnp.zeros_like(o_ref)

    f32 = jnp.float32
    diff = (jnp.abs(y_ref[...].astype(f32) - ry_ref[...].astype(f32))
            + jnp.abs(p_ref[...].astype(f32) - rp_ref[...].astype(f32))
            + jnp.abs(r_ref[...].astype(f32) - rr_ref[...].astype(f32)))

    tile_rows = y_ref.shape[0]
    if need_mask:
        # Last grid step may read rows past the array end (unspecified data);
        # mask them out.  total_rows is a static Python int.
        row = (jax.lax.broadcasted_iota(jnp.int32, (tile_rows, _LANES), 0)
               + step * tile_rows)
        diff = jnp.where(row < total_rows, diff, 0.0)

    # Tile-aligned fold of the (tile_rows,128) block into one (8,128) vreg
    # tile (free-view reshape + pure VPU adds), then accumulate in-place.
    o_ref[...] += diff.reshape(-1, _SUBLANES, _LANES).sum(axis=0)


def _flatten_to_rows(x):
    """Flatten to a lane-dense (rows,128) slab in the ORIGINAL dtype.

    Free (no copy) when x.size is a multiple of 128 and >= 8*128; otherwise a
    tail pad with zeros (zeros contribute 0 to |a-b|)."""
    flat = x.reshape(-1)
    n = flat.shape[0]
    rows = max(_SUBLANES, -(-n // _LANES))
    padded = rows * _LANES
    if padded != n:
        flat = jnp.pad(flat, (0, padded - n))
    return flat.reshape(rows, _LANES)


def head_pose_loss(yaw, pitch, roll, real_yaw, real_pitch, real_roll,
                   *, force_pallas=False):
    """Pallas TPU implementation of HeadPoseLoss.forward (returns f32 scalar)."""
    n = yaw.size
    if n == 0:  # guard the division by zero
        return jnp.float32(0.0)

    # (L1_yaw + L1_pitch + L1_roll) / 3 / pi * 180 == abs_sum * 180 / (3*N*pi)
    scale = jnp.float32(180.0 / (3.0 * float(n) * math.pi))

    if n < _SMALL_N_FAST_PATH and not force_pallas:
        # Small-N fast path: one fused elementwise+reduce, no kernel overhead.
        f32 = jnp.float32
        total = (jnp.sum(jnp.abs(yaw.astype(f32) - real_yaw.astype(f32)))
                 + jnp.sum(jnp.abs(pitch.astype(f32) - real_pitch.astype(f32)))
                 + jnp.sum(jnp.abs(roll.astype(f32) - real_roll.astype(f32))))
        return total * scale

    slabs = [_flatten_to_rows(a)
             for a in (yaw, pitch, roll, real_yaw, real_pitch, real_roll)]
    rows = slabs[0].shape[0]                       # >= 8 by construction

    # Tile rows: multiple of 8, never larger than the slab (so only the
    # standard "partial last block" case can occur), capped for VMEM.
    tile_rows = min(_MAX_TILE_ROWS, (rows // _SUBLANES) * _SUBLANES)
    num_tiles = -(-rows // tile_rows)
    need_mask = (rows % tile_rows) != 0

    kernel = functools.partial(_l1_sum_kernel,
                               total_rows=rows, need_mask=need_mask)

    in_spec = pl.BlockSpec((tile_rows, _LANES), lambda i: (i, 0))
    out_spec = pl.BlockSpec((_SUBLANES, _LANES), lambda i: (0, 0))

    partial_sums = pl.pallas_call(
        kernel,
        out_shape=jax.ShapeDtypeStruct((_SUBLANES, _LANES), jnp.float32),
        grid_spec=pltpu.PrefetchScalarGridSpec(
            num_scalar_prefetch=0,
            grid=(num_tiles,),
            in_specs=[in_spec] * 6,
            out_specs=out_spec,
        ),
        compiler_params=pltpu.CompilerParams(
            dimension_semantics=("arbitrary",),
            vmem_limit_bytes=_VMEM_LIMIT_BYTES,
        ),
    )(*slabs)

    return jnp.sum(partial_sums) * scale


def _reference(yaw, pitch, roll, real_yaw, real_pitch, real_roll):
    return ((jnp.mean(jnp.abs(yaw - real_yaw))
             + jnp.mean(jnp.abs(pitch - real_pitch))
             + jnp.mean(jnp.abs(roll - real_roll))) / 3.0) / math.pi * 180.0


if __name__ == "__main__":
    key = jax.random.PRNGKey(0)

    # Case 1: the natural head-pose shape (batch=2, 66 bins) — run it both
    # through the forced Pallas path (so the kernel is exercised) and the
    # default small-n fast path.
    keys = jax.random.split(key, 6)
    shape = (2, 66)
    angles_small = [jax.random.normal(k, shape, dtype=jnp.float32) * 30.0
                    for k in keys]
    ref_small = _reference(*angles_small)

    loss_pallas = jax.block_until_ready(
        head_pose_loss(*angles_small, force_pallas=True))
    assert jnp.allclose(loss_pallas, ref_small, rtol=1e-5, atol=1e-4), \
        (loss_pallas, ref_small)

    loss_fast = jax.block_until_ready(head_pose_loss(*angles_small))
    assert jnp.allclose(loss_fast, ref_small, rtol=1e-5, atol=1e-4), \
        (loss_fast, ref_small)

    # Case 2: slightly larger batch (40, 66) forced through Pallas — exercises
    # a multi-step reduction grid plus the partial-last-tile row masking.
    keys2 = jax.random.split(jax.random.PRNGKey(1), 6)
    shape2 = (40, 66)
    angles_big = [jax.random.normal(k, shape2, dtype=jnp.float32) * 30.0
                  for k in keys2]
    ref_big = _reference(*angles_big)

    loss_big = jax.block_until_ready(
        head_pose_loss(*angles_big, force_pallas=True))
    assert jnp.allclose(loss_big, ref_big, rtol=1e-5, atol=1e-4), \
        (loss_big, ref_big)

    print("KERNEL_OK")
</pallas_src>

<mosaic_0001>
module attributes {stable_mosaic.version = 11 : i64} {
  func.func @_l1_sum_kernel(%arg0: i32, %arg1: memref<8x128xf32, #tpu.memory_space<vmem>>, %arg2: memref<8x128xf32, #tpu.memory_space<vmem>>, %arg3: memref<8x128xf32, #tpu.memory_space<vmem>>, %arg4: memref<8x128xf32, #tpu.memory_space<vmem>>, %arg5: memref<8x128xf32, #tpu.memory_space<vmem>>, %arg6: memref<8x128xf32, #tpu.memory_space<vmem>>, %arg7: memref<8x128xf32, #tpu.memory_space<vmem>>) attributes {dimension_semantics = [#tpu.dimension_semantics<arbitrary>], iteration_bounds = array<i64: 1>, scalar_prefetch = 0 : i64, scratch_operands = 0 : i64, tpu.core_type = #tpu.core_type<tc>, window_params = [{transform_indices = @transform_0, window_bounds = array<i64: 8, 128>}, {transform_indices = @transform_1, window_bounds = array<i64: 8, 128>}, {transform_indices = @transform_2, window_bounds = array<i64: 8, 128>}, {transform_indices = @transform_3, window_bounds = array<i64: 8, 128>}, {transform_indices = @transform_4, window_bounds = array<i64: 8, 128>}, {transform_indices = @transform_5, window_bounds = array<i64: 8, 128>}, {pipeline_mode = #tpu.pipeline_mode<synchronous>, transform_indices = @transform_6, window_bounds = array<i64: 8, 128>}]} {
    %c0_i32 = arith.constant 0 : i32
    %0 = arith.cmpi eq, %arg0, %c0_i32 : i32
    %1 = arith.extui %0 : i1 to i32
    %c0_i32_0 = arith.constant 0 : i32
    %2 = arith.cmpi ne, %1, %c0_i32_0 : i32
    scf.if %2 {
      %cst_16 = arith.constant 0.000000e+00 : f32
      %22 = vector.broadcast %cst_16 : f32 to vector<8x128xf32>
      %c0_17 = arith.constant 0 : index
      %c0_18 = arith.constant 0 : index
      %23 = vector.load %arg7[%c0_17, %c0_18] : memref<8x128xf32, #tpu.memory_space<vmem>>, vector<8x128xf32>
      tpu.vector_store %arg7[%c0_17, %c0_18], %22 {strides = array<i32>} : memref<8x128xf32, #tpu.memory_space<vmem>>, vector<8x128xf32>,
    } else {
    }
    %c0 = arith.constant 0 : index
    %c0_1 = arith.constant 0 : index
    %3 = vector.load %arg1[%c0, %c0_1] : memref<8x128xf32, #tpu.memory_space<vmem>>, vector<8x128xf32>
    %c0_2 = arith.constant 0 : index
    %c0_3 = arith.constant 0 : index
    %4 = vector.load %arg4[%c0_2, %c0_3] : memref<8x128xf32, #tpu.memory_space<vmem>>, vector<8x128xf32>
    %5 = arith.subf %3, %4 : vector<8x128xf32>
    %6 = math.absf %5 : vector<8x128xf32>
    %c0_4 = arith.constant 0 : index
    %c0_5 = arith.constant 0 : index
    %7 = vector.load %arg2[%c0_4, %c0_5] : memref<8x128xf32, #tpu.memory_space<vmem>>, vector<8x128xf32>
    %c0_6 = arith.constant 0 : index
    %c0_7 = arith.constant 0 : index
    %8 = vector.load %arg5[%c0_6, %c0_7] : memref<8x128xf32, #tpu.memory_space<vmem>>, vector<8x128xf32>
    %9 = arith.subf %7, %8 : vector<8x128xf32>
    %10 = math.absf %9 : vector<8x128xf32>
    %11 = arith.addf %6, %10 : vector<8x128xf32>
    %c0_8 = arith.constant 0 : index
    %c0_9 = arith.constant 0 : index
    %12 = vector.load %arg3[%c0_8, %c0_9] : memref<8x128xf32, #tpu.memory_space<vmem>>, vector<8x128xf32>
    %c0_10 = arith.constant 0 : index
    %c0_11 = arith.constant 0 : index
    %13 = vector.load %arg6[%c0_10, %c0_11] : memref<8x128xf32, #tpu.memory_space<vmem>>, vector<8x128xf32>
    %14 = arith.subf %12, %13 : vector<8x128xf32>
    %15 = math.absf %14 : vector<8x128xf32>
    %16 = arith.addf %11, %15 : vector<8x128xf32>
    %c0_12 = arith.constant 0 : index
    %c0_13 = arith.constant 0 : index
    %17 = vector.load %arg7[%c0_12, %c0_13] : memref<8x128xf32, #tpu.memory_space<vmem>>, vector<8x128xf32>
    %18 = vector.shape_cast %16 : vector<8x128xf32> to vector<1x8x128xf32>
    %cst = arith.constant dense<0.000000e+00> : vector<8x128xf32>
    %19 = vector.multi_reduction <add>, %18, %cst [0] : vector<1x8x128xf32> to vector<8x128xf32>
    %20 = arith.addf %17, %19 : vector<8x128xf32>
    %c0_14 = arith.constant 0 : index
    %c0_15 = arith.constant 0 : index
    %21 = vector.load %arg7[%c0_14, %c0_15] : memref<8x128xf32, #tpu.memory_space<vmem>>, vector<8x128xf32>
    tpu.vector_store %arg7[%c0_14, %c0_15], %20 {strides = array<i32>} : memref<8x128xf32, #tpu.memory_space<vmem>>, vector<8x128xf32>,
    return
  }
  func.func @transform_0(%arg0: i32) -> (i32, i32) {
    %c0_i32 = arith.constant 0 : i32
    %c0_i32_0 = arith.constant 0 : i32
    return %arg0, %c0_i32 : i32, i32
  }
  func.func @transform_1(%arg0: i32) -> (i32, i32) {
    %c0_i32 = arith.constant 0 : i32
    %c0_i32_0 = arith.constant 0 : i32
    return %arg0, %c0_i32 : i32, i32
  }
  func.func @transform_2(%arg0: i32) -> (i32, i32) {
    %c0_i32 = arith.constant 0 : i32
    %c0_i32_0 = arith.constant 0 : i32
    return %arg0, %c0_i32 : i32, i32
  }
  func.func @transform_3(%arg0: i32) -> (i32, i32) {
    %c0_i32 = arith.constant 0 : i32
    %c0_i32_0 = arith.constant 0 : i32
    return %arg0, %c0_i32 : i32, i32
  }
  func.func @transform_4(%arg0: i32) -> (i32, i32) {
    %c0_i32 = arith.constant 0 : i32
    %c0_i32_0 = arith.constant 0 : i32
    return %arg0, %c0_i32 : i32, i32
  }
  func.func @transform_5(%arg0: i32) -> (i32, i32) {
    %c0_i32 = arith.constant 0 : i32
    %c0_i32_0 = arith.constant 0 : i32
    return %arg0, %c0_i32 : i32, i32
  }
  func.func @transform_6(%arg0: i32) -> (i32, i32) {
    %c0_i32 = arith.constant 0 : i32
    %c0_i32_0 = arith.constant 0 : i32
    %c0_i32_1 = arith.constant 0 : i32
    return %c0_i32, %c0_i32_0 : i32, i32
  }
}

</mosaic_0001>

<bundles_post_ra>
// kernel: tpu_custom_call.1
= control target key start
LH: loop header
LB: loop body
LE: loop exit
PB: predicated region body
PF: predicated region fallthrough
CT: control target
= control target key end

     0   :  { %11 = vsyncpa [#allocation3], 0  ;;  %s319_s0 = inlined_call_operand.hbm [shape: f32[8,128], index: 0, kind: input, shape index: {}]   ;;  %s320_s1 = inlined_call_operand.hbm [shape: f32[8,128], index: 1, kind: input, shape index: {}]   ;;  %s321_s2 = inlined_call_operand.hbm [shape: f32[8,128], index: 2, kind: input, shape index: {}]   ;;  %s322_s3 = inlined_call_operand.hbm [shape: f32[8,128], index: 3, kind: input, shape index: {}]   ;;  %s323_s4 = inlined_call_operand.hbm [shape: f32[8,128], index: 4, kind: input, shape index: {}]   ;;  %s324_s5 = inlined_call_operand.vmem [shape: f32[8,128], index: 5, kind: input, shape index: {}]   ;;  %s325_s6 = inlined_call_operand.hbm [shape: f32[8,128], index: 6, kind: output, shape index: {}]  }
   0x1   :  { %12 = vsyncpa [#allocation6], 0 }
   0x2   :  { %13 = vsyncpa [#allocation9], 0 }
   0x3   :  { %14 = vsyncpa [#allocation4], 0  ;;  %s257_s21 = smov [#allocation5]   ;;  %s258_s23 = smov [#allocation8]  }
   0x4   :  { %s31_s22 = sshll.u32 %s257_s21, 4  ;;  %s51_s24 = sshll.u32 %s258_s23, 4  ;;  %s32_s22 = int_to_ptr.vmem [resolvable:$true] %s31_s22  ;;  %s52_s24 = int_to_ptr.vmem [resolvable:$true] %s51_s24 }
   0x5   :  { %s137_s25 = scalar_lea.vmem %s32_s22, 128  ;;  %p142_p1 = scmp.lt.s32.totalorder %s32_s22, %s32_s22 }
   0x6   :  { %p138_p0 = scmp.ne.s32.totalorder %s32_s22, %s137_s25  ;;  %p143_p2 = scmp.lt.s32.totalorder %s137_s25, %s137_s25 }
   0x8   :  { %p144_p3 = por %p143_p2, %p142_p1 }
   0xa   :  { %p145_p4 = pnand %p144_p3, %p138_p0 }
   0xc   :  { %148 = shalt.err (!%p145_p4)
}
   0xd   :  { %34 = dma.hbm_to_vmem [thread:$0]  %s320_s1, 128, %s32_s22, [#allocation6]  }
   0xe   :  { %s157_s28 = scalar_lea.vmem %s52_s24, 128  ;;  %p162_p6 = scmp.lt.s32.totalorder %s52_s24, %s52_s24 }
   0xf   :  { %p158_p5 = scmp.ne.s32.totalorder %s52_s24, %s157_s28  ;;  %p163_p7 = scmp.lt.s32.totalorder %s157_s28, %s157_s28 }
  0x11   :  { %p164_p8 = por %p163_p7, %p162_p6 }
  0x13   :  { %p165_p9 = pnand %p164_p8, %p158_p5 }
  0x15   :  { %168 = shalt.err (!%p165_p9)
}
  0x16   :  { %54 = dma.hbm_to_vmem [thread:$0]  %s322_s3, 128, %s52_s24, [#allocation9]  }
  0x17   :  { %s259_s7 = smov [#allocation2]   ;;  %s260_s9 = smov [#allocation7]  }
  0x18   :  { %s21_s8 = sshll.u32 %s259_s7, 4  ;;  %s41_s10 = sshll.u32 %s260_s9, 4  ;;  %s22_s8 = int_to_ptr.vmem [resolvable:$true] %s21_s8  ;;  %s42_s10 = int_to_ptr.vmem [resolvable:$true] %s41_s10 }
  0x19   :  { %s177_s11 = scalar_lea.vmem %s22_s8, 128  ;;  %p182_p11 = scmp.lt.s32.totalorder %s22_s8, %s22_s8 }
  0x1a   :  { %p178_p10 = scmp.ne.s32.totalorder %s22_s8, %s177_s11  ;;  %p183_p12 = scmp.lt.s32.totalorder %s177_s11, %s177_s11 }
  0x1c   :  { %p184_p13 = por %p183_p12, %p182_p11 }
  0x1e   :  { %p185_p0 = pnand %p184_p13, %p178_p10 }
  0x20   :  { %188 = shalt.err (!%p185_p0)
}
  0x21   :  { %24 = dma.hbm_to_vmem [thread:$0]  %s319_s0, 128, %s22_s8, [#allocation3]  }
  0x22   :  { %s197_s13 = scalar_lea.vmem %s42_s10, 128  ;;  %p202_p2 = scmp.lt.s32.totalorder %s42_s10, %s42_s10 }
  0x23   :  { %p198_p1 = scmp.ne.s32.totalorder %s42_s10, %s197_s13  ;;  %p203_p3 = scmp.lt.s32.totalorder %s197_s13, %s197_s13 }
  0x25   :  { %p204_p4 = por %p203_p3, %p202_p2 }
  0x27   :  { %p205_p5 = pnand %p204_p4, %p198_p1 }
  0x29   :  { %208 = shalt.err (!%p205_p5)
}
  0x2a   :  { %44 = dma.hbm_to_vmem [thread:$0]  %s321_s2, 128, %s42_s10, [#allocation6]  }
  0x2b   :  { %s261_s15 = smov [#allocation10]  }
  0x2c   :  { %s61_s16 = sshll.u32 %s261_s15, 4  ;;  %s62_s16 = int_to_ptr.vmem [resolvable:$true] %s61_s16 }
  0x2d   :  { %s217_s17 = scalar_lea.vmem %s62_s16, 128  ;;  %p222_p7 = scmp.lt.s32.totalorder %s62_s16, %s62_s16 }
  0x2e   :  { %p218_p6 = scmp.ne.s32.totalorder %s62_s16, %s217_s17  ;;  %p223_p8 = scmp.lt.s32.totalorder %s217_s17, %s217_s17 }
  0x30   :  { %p224_p9 = por %p223_p8, %p222_p7 }
  0x32   :  { %p225_p10 = pnand %p224_p9, %p218_p6 }
  0x34   :  { %228 = shalt.err (!%p225_p10)
}
  0x35   :  { %64 = dma.hbm_to_vmem [thread:$0]  %s323_s4, 128, %s62_s16, [#allocation9]  }
  0x36   :  { %249 = dma.done.wait [#allocation3], 128  }
  0x37   :  { %250 = vsyncadd [#allocation3], 4294967168 }
  0x38   :  { %251 = dma.done.wait [#allocation6], 256  }
  0x39   :  { %252 = vsyncadd [#allocation6], 4294967040 }
  0x3a   :  { %253 = dma.done.wait [#allocation9], 256  }
  0x3b   :  { %254 = vsyncadd [#allocation9], 4294967040  ;;  %v87_v0 = vld [vmem:[#allocation2] sm:$0xff]  ;;  %v88_v1 = vld [vmem:[#allocation8] sm:$0xff]  ;;  %s262_s4 = smov [#allocation11]  }
  0x3c   :  { %v91_v2 = vld [vmem:[#allocation5] sm:$0xff]  ;;  %v89_v3 = vsub.f32 %v87_v0, %v88_v1  ;;  %v92_v4 = vld [vmem:[#allocation10] sm:$0xff]  ;;  %v96_v5 = vld [vmem:[#allocation7] sm:$0xff]  ;;  %s111_s20 = sshll.u32 %s262_s4, 4  ;;  %s112_s20 = int_to_ptr.vmem [resolvable:$true] %s111_s20 }
  0x3d   :  { %v97_v6 = vld [vmem:[%s324_s5] sm:$0xff]  ;;  %v93_v7 = vsub.f32 %v91_v2, %v92_v4  ;;  %s229_s21 = scalar_lea.vmem %s112_s20, 128  ;;  %p234_p12 = scmp.lt.s32.totalorder %s112_s20, %s112_s20 }
  0x3e   :  { %v98_v8 = vsub.f32 %v96_v5, %v97_v6  ;;  %v90_v9 = vand.u32 2147483647, %v89_v3  ;;  %p230_p11 = scmp.ne.s32.totalorder %s112_s20, %s229_s21  ;;  %p235_p13 = scmp.lt.s32.totalorder %s229_s21, %s229_s21 }
  0x3f   :  { %v94_v10 = vand.u32 2147483647, %v93_v7 }
  0x40   :  { %v99_v11 = vand.u32 2147483647, %v98_v8  ;;  %p236_p0 = por %p235_p13, %p234_p12 }
  0x41   :  { %v95_v12 = vadd.f32 %v94_v10, %v90_v9 }
  0x42   :  { %p237_p1 = pnand %p236_p0, %p230_p11 }
  0x43   :  { %v100_v13 = vadd.f32 %v99_v11, %v95_v12 }
  0x45   :  { %104 = vst [vmem:[#allocation11] sm:$0xff] %v100_v13 }
  0x46   :  { %240 = shalt.err (!%p237_p1)
}
  0x47   :  { %114 = dma.vmem_to_hbm [thread:$0]  %s112_s20, 128, %s325_s6, [#allocation4]  }
  0x48   :  { %255 = dma.done.wait [#allocation4], 128  }
  0x49   :  { %256 = vsyncadd [#allocation4], 4294967168 }
  0x4a   :  { %118 = vsyncpa [#allocation3], 1 }
  0x4b   :  { %119 = vsyncpa [#allocation6], 1 }
  0x4c   :  { %120 = vsyncpa [#allocation9], 1 }
  0x4d   :  { %121 = vsyncpa [#allocation4], 1 }

</bundles_post_ra>
